<compile_context>
chip_gen: v6e
topology: v6e:2x2x1
jax: 0.10.0
libtpu: 0.0.40
codegen_flags: <defaults>
</compile_context>

<pallas_src>
import jax
import jax.numpy as jnp
from jax import lax
from jax.experimental import pallas as pl
from jax.experimental.pallas import tpu as pltpu


def _decompress_kernel(q_ref, pt_ref, o_ref):
    # q_ref : (B_TILE, C, R)
    # pt_ref: (B_TILE, R, HW_TILE)   -- p already transposed in the wrapper
    # o_ref : (B_TILE, C, HW_TILE)
    # Batched matmul contracting R; f32 accumulation on the MXU, no operand upcast,
    # no in-kernel transpose.
    o_ref[...] = lax.dot_general(
        q_ref[...],
        pt_ref[...],
        dimension_numbers=(((2,), (1,)), ((0,), (0,))),
        preferred_element_type=jnp.float32,
    ).astype(o_ref.dtype)


def _pick_tiles(B, C, HW, R, itemsize):
    """Pick (B_TILE, HW_TILE) so blocks are sublane/lane dense and fit VMEM."""
    # Fuse batches: fills sublanes when C < 8 and amortizes per-step overhead,
    # capped so the fused output block stays a modest sublane count.
    b_tile = 1
    for cand in range(1, B + 1):
        if B % cand == 0 and cand * C <= 256:
            b_tile = cand

    # HW tile: lane-dense (multiple of 128); double-buffered in/out blocks kept
    # well under the smallest default scoped-VMEM limit (16 MiB on v5e).
    budget = 12 * 1024 * 1024
    if HW % 128 != 0:
        # Block must then span the full HW extent (fine for small shapes).
        return b_tile, HW
    hw_tile = 128
    for cand in (4096, 2048, 1024, 512, 256, 128):
        if HW % cand:
            continue
        per_step = 2 * itemsize * (
            b_tile * C * cand + b_tile * R * cand + b_tile * C * R
        )
        if per_step <= budget:
            hw_tile = cand
            break
    return b_tile, hw_tile


def power_svd_decompress(p_buf, q_buf, out_shape):
    """p_buf: (B, H*W, R), q_buf: (B, C, R) -> (B, C, H, W) == out_shape."""
    B, C, H, W = out_shape
    HW = H * W
    R = p_buf.shape[-1]
    assert p_buf.shape == (B, HW, R)
    assert q_buf.shape == (B, C, R)

    out_dtype = q_buf.dtype
    b_tile, hw_tile = _pick_tiles(B, C, HW, R, jnp.dtype(out_dtype).itemsize)

    # One-time layout plumbing in HBM (off the kernel's critical path):
    # (B, HW, R) -> (B, R, HW) so the kernel's p tile is lane-dense in HW.
    p_t = jnp.transpose(p_buf, (0, 2, 1))

    flat = pl.pallas_call(
        _decompress_kernel,
        out_shape=jax.ShapeDtypeStruct((B, C, HW), out_dtype),
        grid_spec=pl.GridSpec(
            grid=(B // b_tile, HW // hw_tile),
            in_specs=[
                pl.BlockSpec((b_tile, C, R), lambda b, h: (b, 0, 0)),
                pl.BlockSpec((b_tile, R, hw_tile), lambda b, h: (b, 0, h)),
            ],
            out_specs=pl.BlockSpec((b_tile, C, hw_tile), lambda b, h: (b, 0, h)),
        ),
        compiler_params=pltpu.CompilerParams(
            dimension_semantics=("parallel", "parallel"),
        ),
    )(q_buf, p_t)

    return flat.reshape(B, C, H, W)


class PowerSVDServerRecvLayer:
    """JAX/Pallas port of the PyTorch module (forward only).

    dist.recv / process groups have no Pallas equivalent; the p/q buffers are
    initialized deterministically in-script (they stand in for the received
    tensors).
    """

    def __init__(self, rank, shape, n_iter, recv_rank, key):
        B, C, H, W = shape
        k1, k2, k3, k4 = jax.random.split(key, 4)
        # torch.rand -> uniform [0, 1)
        self.p_buffer = [jax.random.uniform(k1, (B, H * W, rank), dtype=jnp.float32)]
        self.q_buffer = [jax.random.uniform(k2, (B, C, rank), dtype=jnp.float32)]
        self.grad_p_buffer = [jax.random.uniform(k3, (B, H * W, rank), dtype=jnp.float32)]
        self.grad_q_buffer = [jax.random.uniform(k4, (B, C, rank), dtype=jnp.float32)]
        self.iter = n_iter
        self.recv_rank = recv_rank
        # TODO(synk): dist.recv of p_buffer/q_buffer from recv_rank is a network
        # collective with no Pallas equivalent; buffers are used as-is.

    def __call__(self, x):
        return power_svd_decompress(self.p_buffer[0], self.q_buffer[0], x.shape)


if __name__ == "__main__":
    key = jax.random.PRNGKey(0)
    k_in, k_layer = jax.random.split(key)

    B, C, H, W = 2, 4, 16, 16
    rank = 4
    x = jax.random.normal(k_in, (B, C, H, W), dtype=jnp.float32)

    layer = PowerSVDServerRecvLayer(rank, (B, C, H, W), n_iter=2, recv_rank=0, key=k_layer)
    out = layer(x)
    out = jax.block_until_ready(out)

    # Reference check in plain JAX: q @ p^T reshaped to input shape.
    ref = jnp.matmul(
        layer.q_buffer[0], jnp.transpose(layer.p_buffer[0], (0, 2, 1))
    ).reshape(B, C, H, W)
    assert out.shape == (B, C, H, W)
    assert out.dtype == ref.dtype
    assert jnp.allclose(out, ref, atol=1e-5, rtol=1e-5)

    print("KERNEL_OK")
</pallas_src>

<mosaic_0001>
module attributes {stable_mosaic.version = 11 : i64} {
  func.func @_decompress_kernel(%arg0: i32, %arg1: i32, %arg2: memref<2x4x4xf32, #tpu.memory_space<vmem>>, %arg3: memref<2x4x256xf32, #tpu.memory_space<vmem>>, %arg4: memref<2x4x256xf32, #tpu.memory_space<vmem>>) attributes {dimension_semantics = [#tpu.dimension_semantics<parallel>, #tpu.dimension_semantics<parallel>], iteration_bounds = array<i64: 1, 1>, scalar_prefetch = 0 : i64, scratch_operands = 0 : i64, tpu.core_type = #tpu.core_type<tc>, window_params = [{transform_indices = @transform_0, window_bounds = array<i64: 2, 4, 4>}, {transform_indices = @transform_1, window_bounds = array<i64: 2, 4, 256>}, {transform_indices = @transform_2, window_bounds = array<i64: 2, 4, 256>}]} {
    %c0 = arith.constant 0 : index
    %c0_0 = arith.constant 0 : index
    %c0_1 = arith.constant 0 : index
    %0 = vector.load %arg2[%c0, %c0_0, %c0_1] : memref<2x4x4xf32, #tpu.memory_space<vmem>>, vector<2x4x4xf32>
    %c0_2 = arith.constant 0 : index
    %c0_3 = arith.constant 0 : index
    %c0_4 = arith.constant 0 : index
    %1 = vector.load %arg3[%c0_2, %c0_3, %c0_4] : memref<2x4x256xf32, #tpu.memory_space<vmem>>, vector<2x4x256xf32>
    %cst = arith.constant dense<0.000000e+00> : vector<2x4x256xf32>
    %2 = tpu.matmul %0, %1, %cst {dimension_numbers = #tpu.dot_dimension_numbers<[2], [1], [1], [2], [0, 0, 0, 1, 1, 2], [0], [0]>} : vector<2x4x4xf32>, vector<2x4x256xf32>, vector<2x4x256xf32> -> vector<2x4x256xf32>
    %c0_5 = arith.constant 0 : index
    %c0_6 = arith.constant 0 : index
    %c0_7 = arith.constant 0 : index
    %3 = vector.load %arg4[%c0_5, %c0_6, %c0_7] : memref<2x4x256xf32, #tpu.memory_space<vmem>>, vector<2x4x256xf32>
    tpu.vector_store %arg4[%c0_5, %c0_6, %c0_7], %2 {strides = array<i32>} : memref<2x4x256xf32, #tpu.memory_space<vmem>>, vector<2x4x256xf32>,
    return
  }
  func.func @transform_0(%arg0: i32, %arg1: i32) -> (i32, i32, i32) {
    %c0_i32 = arith.constant 0 : i32
    %c0_i32_0 = arith.constant 0 : i32
    %c0_i32_1 = arith.constant 0 : i32
    return %arg0, %c0_i32, %c0_i32_0 : i32, i32, i32
  }
  func.func @transform_1(%arg0: i32, %arg1: i32) -> (i32, i32, i32) {
    %c0_i32 = arith.constant 0 : i32
    %c0_i32_0 = arith.constant 0 : i32
    return %arg0, %c0_i32, %arg1 : i32, i32, i32
  }
  func.func @transform_2(%arg0: i32, %arg1: i32) -> (i32, i32, i32) {
    %c0_i32 = arith.constant 0 : i32
    %c0_i32_0 = arith.constant 0 : i32
    return %arg0, %c0_i32, %arg1 : i32, i32, i32
  }
}

</mosaic_0001>

<bundles_post_ra>
// kernel: tpu_custom_call.1
= control target key start
LH: loop header
LB: loop body
LE: loop exit
PB: predicated region body
PF: predicated region fallthrough
CT: control target
= control target key end

     0   :  { %7 = vsyncpa [#allocation3], 0  ;;  %s354_s0 = inlined_call_operand.hbm [shape: f32[2,4,4], index: 0, kind: input, shape index: {}]   ;;  %s355_s1 = inlined_call_operand.hbm [shape: f32[2,4,256], index: 1, kind: input, shape index: {}]   ;;  %s356_s2 = inlined_call_operand.hbm [shape: f32[2,4,256], index: 2, kind: output, shape index: {}]  }
   0x1   :  { %8 = vsyncpa [#allocation6], 0 }
   0x2   :  { %9 = vsyncpa [#allocation4], 0  ;;  %s316_s9 = smov [#allocation2]  }
   0x3   :  { %s15_s10 = sshll.u32 %s316_s9, 4  ;;  %s16_s10 = int_to_ptr.vmem [resolvable:$true] %s15_s10 }
   0x4   :  { %s258_s11 = scalar_lea.vmem %s16_s10, 128  ;;  %p263_p1 = scmp.lt.s32.totalorder %s16_s10, %s16_s10 }
   0x5   :  { %p259_p0 = scmp.ne.s32.totalorder %s16_s10, %s258_s11  ;;  %p264_p2 = scmp.lt.s32.totalorder %s258_s11, %s258_s11 }
   0x7   :  { %p265_p3 = por %p264_p2, %p263_p1 }
   0x9   :  { %p266_p4 = pnand %p265_p3, %p259_p0 }
   0xb   :  { %269 = shalt.err (!%p266_p4)
}
   0xc   :  { %s317_s12 = smov 64   ;;  %s318_s13 = smov 4  }
   0xd   :  { %21 = dma.hbm_to_vmem [thread:$0]  %s354_s0, 128, %s16_s10, [#allocation3], %s317_s12, %s317_s12, %s318_s13  }
   0xe   :  { %s319_s16 = smov [#allocation5]  }
   0xf   :  { %s27_s17 = sshll.u32 %s319_s16, 4  ;;  %s28_s17 = int_to_ptr.vmem [resolvable:$true] %s27_s17 }
  0x10   :  { %s278_s18 = scalar_lea.vmem %s28_s17, 256  ;;  %p283_p6 = scmp.lt.s32.totalorder %s28_s17, %s28_s17 }
  0x11   :  { %p279_p5 = scmp.ne.s32.totalorder %s28_s17, %s278_s18  ;;  %p284_p7 = scmp.lt.s32.totalorder %s278_s18, %s278_s18 }
  0x13   :  { %p285_p8 = por %p284_p7, %p283_p6 }
  0x15   :  { %p286_p9 = pnand %p285_p8, %p279_p5 }
  0x17   :  { %289 = shalt.err (!%p286_p9)
}
  0x18   :  { %s320_s19 = smov 128   ;;  %s321_s20 = smov 8  }
  0x19   :  { %33 = dma.hbm_to_vmem [thread:$0]  %s355_s1, 256, %s28_s17, [#allocation6], %s320_s19, %s320_s19, %s321_s20  }
  0x1a   :  { %310 = dma.done.wait [#allocation3], 128  }
  0x1b   :  { %311 = vsyncadd [#allocation3], 4294967168 }
  0x1c   :  { %312 = dma.done.wait [#allocation6], 256  }
  0x1d   :  { %313 = vsyncadd [#allocation6], 4294967040  ;;  %v322_v0 = vmov 0.0   ;;  %v42_v1 = vld [vmem:[#allocation5] sm:$0xff]  ;;  %vm50_vm0 = vcmask 1043456   ;;  %v43_v2 = vld [vmem:[#allocation5 + $0x8] sm:$0xff] }
  0x1e   :  { %119 = vmatprep.mubr.f32.mxu0 %v322_v0  ;;  %199 = vmatprep.mubr.f32.mxu1 %v322_v0  ;;  %v45_v3 = vcombine.high %v42_v1, %v42_v1  ;;  %v127_v4 = vcombine.high %v43_v2, %v43_v2  ;;  %v40_v5 = vld [vmem:[#allocation2] sm:$0xf]  ;;  %vm46_vm1 = vcmask 31744   ;;  %v41_v6 = vld [vmem:[#allocation2 + $0x4] sm:$0xf]  ;;  %s323_s0 = smov [#allocation7]  }
  0x1f   :  { %s221_s1 = sshll.u32 %s323_s0, 4  ;;  %s222_s1 = int_to_ptr.vmem [resolvable:$true] %s221_s1 }
  0x20   :  { %234 = vmatprep.subr.msk.mxu0 %vm50_vm0, %v45_v3  ;;  %237 = vmatprep.subr.msk.mxu1 %vm50_vm0, %v127_v4  ;;  %s290_s23 = scalar_lea.vmem %s222_s1, 256  ;;  %p295_p11 = scmp.lt.s32.totalorder %s222_s1, %s222_s1 }
  0x21   :  { %235 = vmatpush1.msk.msra.mxu0 %vm50_vm0, %v42_v1  ;;  %238 = vmatpush1.msk.msra.mxu1 %vm50_vm0, %v43_v2  ;;  %p291_p10 = scmp.ne.s32.totalorder %s222_s1, %s290_s23  ;;  %p296_p12 = scmp.lt.s32.totalorder %s290_s23, %s290_s23 }
  0x22   :  { %236 = vmatmul.mubr.msk.f32.vlgmr.msra.gmra.mxu0 %vm46_vm1, %v40_v5  ;;  %239 = vmatmul.mubr.msk.f32.vlgmr.msra.gmra.mxu1 %vm46_vm1, %v41_v6 }
  0x23   :  { %p297_p13 = por %p296_p12, %p295_p11 }
  0x25   :  { %p298_p0 = pnand %p297_p13, %p291_p10 }
  0xe2   :  { %v121_v7 = vpop.f32.mrf.mxu0  ;;  %v201_v8 = vpop.f32.mrf.mxu1 }
  0xe4   :  { %v123_v9 = vpop.f32.mrf.mxu0  ;;  %v203_v10 = vpop.f32.mrf.mxu1 }
  0xe5   :  { %v210_v11 = vcombine.low %v121_v7, %v123_v9  ;;  %v211_v12 = vcombine.low %v201_v8, %v203_v10 }
  0xe7   :  { %214 = vst [vmem:[#allocation7] sm:$0xff] %v210_v11  ;;  %215 = vst [vmem:[#allocation7 + $0x8] sm:$0xff] %v211_v12 }
  0xe8   :  { %301 = shalt.err (!%p298_p0)
}
  0xe9   :  { %227 = dma.vmem_to_hbm [thread:$0]  %s222_s1, 256, %s356_s2, [#allocation4], %s320_s19, %s320_s19, %s321_s20  }
  0xea   :  { %314 = dma.done.wait [#allocation4], 256  }
  0xeb   :  { %315 = vsyncadd [#allocation4], 4294967040 }
  0xec   :  { %231 = vsyncpa [#allocation3], 1 }
  0xed   :  { %232 = vsyncpa [#allocation6], 1 }
  0xee   :  { %233 = vsyncpa [#allocation4], 1 }

</bundles_post_ra>
